<compile_context>
chip_gen: v7x
topology: tpu7x:2x2x1
jax: 0.10.0
libtpu: 0.0.40
codegen_flags: <defaults>
</compile_context>

<pallas_src>
import jax
import jax.numpy as jnp
from jax.experimental import pallas as pl
from jax.experimental.pallas import tpu as pltpu

H_IN = 768
H_OUT = 128


# ----------------------------------------------------------------------------
# Pallas kernel: view aggregation + fused Linear(768->128) + ReLU
#   cls_ref : [2, 2B, H_IN]  f32   (axis 0 = view i/j; rows = [input1 batch ; input2 batch])
#   w_ref   : [H_IN, H_OUT]  bf16  (fc weight, pre-transposed)
#   b_ref   : [1, H_OUT]     f32
#   out_ref : [2B, H_OUT]    f32   (rows 0..B-1 -> proj1, rows B..2B-1 -> proj2)
# ----------------------------------------------------------------------------
def contrastive_head_kernel(cls_ref, w_ref, b_ref, out_ref):
    # Aggregate the two views in f32 (matches PyTorch (a + b) / 2).
    agg = (cls_ref[0] + cls_ref[1]) * 0.5                       # [2B, H_IN] f32

    # Single fused matmul for both projections: bf16 operands, f32 accumulate (MXU).
    p = jnp.dot(agg.astype(jnp.bfloat16), w_ref[...],
                preferred_element_type=jnp.float32) + b_ref[...]

    # ReLU + single lane-dense store.
    out_ref[...] = jnp.maximum(p, 0.0)


def contrastive_head(out1_i, out1_j, out2_i, out2_j, w_t, bias):
    """out*_*: [B, S, H_IN] f32 encoder outputs; w_t: [H_IN, H_OUT]; bias: [H_OUT]."""
    B, S, H = out1_i.shape
    assert H == H_IN

    # Slice CLS rows in the wrapper so only [B, 768] per branch (not [B, S, 768])
    # ever crosses HBM -> VMEM, and collapse the 4 inputs into ONE DMA descriptor.
    cls_i = jnp.concatenate([out1_i[:, 0, :], out2_i[:, 0, :]], axis=0)  # [2B, H]
    cls_j = jnp.concatenate([out1_j[:, 0, :], out2_j[:, 0, :]], axis=0)  # [2B, H]
    cls_stacked = jnp.stack([cls_i, cls_j], axis=0)                      # [2, 2B, H] f32

    w_bf16 = w_t.astype(jnp.bfloat16)      # halve weight DMA; native bf16 MXU path
    b2d = bias.reshape(1, H_OUT).astype(jnp.float32)

    cls_spec = pl.BlockSpec((2, 2 * B, H_IN), lambda i: (0, 0, 0))
    w_spec = pl.BlockSpec((H_IN, H_OUT), lambda i: (0, 0))
    b_spec = pl.BlockSpec((1, H_OUT), lambda i: (0, 0))
    out_spec = pl.BlockSpec((2 * B, H_OUT), lambda i: (0, 0))

    # TODO(synk): for large B on v7x, add a batch grid axis with
    # dimension_semantics=("parallel",) so both TensorCores share the work;
    # at B=2 a single grid step is optimal.
    proj = pl.pallas_call(
        contrastive_head_kernel,
        grid=(1,),
        in_specs=[cls_spec, w_spec, b_spec],
        out_specs=out_spec,
        out_shape=jax.ShapeDtypeStruct((2 * B, H_OUT), jnp.float32),
        compiler_params=pltpu.CompilerParams(
            dimension_semantics=("arbitrary",)),
    )(cls_stacked, w_bf16, b2d)

    return proj[:B], proj[B:]


# ----------------------------------------------------------------------------
# Glue: synthetic deterministic encoder (external module in the PyTorch code)
# ----------------------------------------------------------------------------
def synthetic_encoder(enc_params, input_ids, attention_mask):
    # TODO(synk): the real encoder is an arbitrary external nn.Module passed to
    # __init__ (e.g. BERT); it is replaced here by a deterministic synthetic
    # embedding encoder that produces a [B, S, 768] hidden-state tensor.
    emb = enc_params["tok_emb"][input_ids]                       # [B, S, H]
    emb = emb + enc_params["pos_emb"][None, : input_ids.shape[1], :]
    hidden = jnp.tanh(emb) * attention_mask[..., None].astype(emb.dtype)
    return hidden


def contrastive_model_forward(params, input1, input2):
    out1_i = synthetic_encoder(params["encoder"],
                               input1["input1_i"]["input_ids"],
                               input1["input1_i"]["attention_mask"])
    out1_j = synthetic_encoder(params["encoder"],
                               input1["input1_j"]["input_ids"],
                               input1["input1_j"]["attention_mask"])
    out2_i = synthetic_encoder(params["encoder"],
                               input2["input2_i"]["input_ids"],
                               input2["input2_i"]["attention_mask"])
    out2_j = synthetic_encoder(params["encoder"],
                               input2["input2_j"]["input_ids"],
                               input2["input2_j"]["attention_mask"])
    return contrastive_head(out1_i, out1_j, out2_i, out2_j,
                            params["fc_w_t"], params["fc_b"])


if __name__ == "__main__":
    B, S, VOCAB = 2, 8, 50

    key = jax.random.PRNGKey(0)
    k_tok, k_pos, k_fc, k_ids = jax.random.split(key, 4)

    params = {
        "encoder": {
            "tok_emb": jax.random.normal(k_tok, (VOCAB, H_IN), jnp.float32) * 0.02,
            "pos_emb": jax.random.normal(k_pos, (S, H_IN), jnp.float32) * 0.02,
        },
        # nn.Linear(768, 128): weight [128, 768]; we keep its transpose [768, 128].
        "fc_w_t": (jax.random.normal(k_fc, (H_OUT, H_IN), jnp.float32) * 0.02).T,
        "fc_b": jnp.zeros((H_OUT,), jnp.float32),
    }

    ids_keys = jax.random.split(k_ids, 4)
    def make_branch(k):
        return {
            "input_ids": jax.random.randint(k, (B, S), 0, VOCAB, dtype=jnp.int32),
            "attention_mask": jnp.ones((B, S), jnp.int32),
        }

    input1 = {"input1_i": make_branch(ids_keys[0]),
              "input1_j": make_branch(ids_keys[1])}
    input2 = {"input2_i": make_branch(ids_keys[2]),
              "input2_j": make_branch(ids_keys[3])}

    proj1, proj2 = contrastive_model_forward(params, input1, input2)
    jax.block_until_ready((proj1, proj2))

    # sanity: shapes and ReLU nonnegativity
    assert proj1.shape == (B, H_OUT) and proj2.shape == (B, H_OUT)
    assert bool(jnp.all(proj1 >= 0)) and bool(jnp.all(proj2 >= 0))

    # pure-JAX reference (f32) vs kernel (bf16 operands, f32 accumulate)
    def ref_head(o1i, o1j, o2i, o2j, w_t, b):
        a1 = (o1i[:, 0, :] + o1j[:, 0, :]) * 0.5
        a2 = (o2i[:, 0, :] + o2j[:, 0, :]) * 0.5
        return (jnp.maximum(a1 @ w_t + b, 0.0), jnp.maximum(a2 @ w_t + b, 0.0))

    r1, r2 = ref_head(
        synthetic_encoder(params["encoder"], **input1["input1_i"]),
        synthetic_encoder(params["encoder"], **input1["input1_j"]),
        synthetic_encoder(params["encoder"], **input2["input2_i"]),
        synthetic_encoder(params["encoder"], **input2["input2_j"]),
        params["fc_w_t"], params["fc_b"])
    assert bool(jnp.allclose(proj1, r1, rtol=5e-2, atol=5e-3))
    assert bool(jnp.allclose(proj2, r2, rtol=5e-2, atol=5e-3))

    print("KERNEL_OK")
</pallas_src>

<mosaic_0001>
module attributes {stable_mosaic.version = 11 : i64} {
  func.func @contrastive_head_kernel(%arg0: i32, %arg1: memref<2x4x768xf32, #tpu.memory_space<vmem>>, %arg2: memref<768x128xbf16, #tpu.memory_space<vmem>>, %arg3: memref<1x128xf32, #tpu.memory_space<vmem>>, %arg4: memref<4x128xf32, #tpu.memory_space<vmem>>) attributes {dimension_semantics = [#tpu.dimension_semantics<arbitrary>], iteration_bounds = array<i64: 1>, scalar_prefetch = 0 : i64, scratch_operands = 0 : i64, tpu.core_type = #tpu.core_type<tc>, window_params = [{pipeline_mode = #tpu.pipeline_mode<synchronous>, transform_indices = @transform_0, window_bounds = array<i64: 2, 4, 768>}, {pipeline_mode = #tpu.pipeline_mode<synchronous>, transform_indices = @transform_1, window_bounds = array<i64: 768, 128>}, {pipeline_mode = #tpu.pipeline_mode<synchronous>, transform_indices = @transform_2, window_bounds = array<i64: 1, 128>}, {pipeline_mode = #tpu.pipeline_mode<synchronous>, transform_indices = @transform_3, window_bounds = array<i64: 4, 128>}]} {
    %c0 = arith.constant 0 : index
    %c0_0 = arith.constant 0 : index
    %c0_1 = arith.constant 0 : index
    %0 = vector.load %arg1[%c0, %c0_0, %c0_1] : memref<2x4x768xf32, #tpu.memory_space<vmem>>, vector<1x4x768xf32>
    %1 = vector.shape_cast %0 : vector<1x4x768xf32> to vector<4x768xf32>
    %c1 = arith.constant 1 : index
    %c0_2 = arith.constant 0 : index
    %c0_3 = arith.constant 0 : index
    %2 = vector.load %arg1[%c1, %c0_2, %c0_3] : memref<2x4x768xf32, #tpu.memory_space<vmem>>, vector<1x4x768xf32>
    %3 = vector.shape_cast %2 : vector<1x4x768xf32> to vector<4x768xf32>
    %4 = arith.addf %1, %3 : vector<4x768xf32>
    %cst = arith.constant 5.000000e-01 : f32
    %5 = vector.broadcast %cst : f32 to vector<4x768xf32>
    %6 = arith.mulf %4, %5 : vector<4x768xf32>
    %7 = arith.truncf %6 : vector<4x768xf32> to vector<4x768xbf16>
    %c0_4 = arith.constant 0 : index
    %c0_5 = arith.constant 0 : index
    %8 = vector.load %arg2[%c0_4, %c0_5] : memref<768x128xbf16, #tpu.memory_space<vmem>>, vector<768x128xbf16>
    %cst_6 = arith.constant dense<0.000000e+00> : vector<4x128xf32>
    %9 = tpu.matmul %7, %8, %cst_6 {dimension_numbers = #tpu.dot_dimension_numbers<[1], [0], [0], [1], [0, 0, 1, 1], [], []>} : vector<4x768xbf16>, vector<768x128xbf16>, vector<4x128xf32> -> vector<4x128xf32>
    %c0_7 = arith.constant 0 : index
    %c0_8 = arith.constant 0 : index
    %10 = vector.load %arg3[%c0_7, %c0_8] : memref<1x128xf32, #tpu.memory_space<vmem>>, vector<1x128xf32>
    %11 = vector.broadcast %10 : vector<1x128xf32> to vector<4x128xf32>
    %12 = arith.addf %9, %11 : vector<4x128xf32>
    %cst_9 = arith.constant 0.000000e+00 : f32
    %13 = vector.broadcast %cst_9 : f32 to vector<4x128xf32>
    %14 = arith.maximumf %12, %13 : vector<4x128xf32>
    %c0_10 = arith.constant 0 : index
    %c0_11 = arith.constant 0 : index
    %15 = vector.load %arg4[%c0_10, %c0_11] : memref<4x128xf32, #tpu.memory_space<vmem>>, vector<4x128xf32>
    tpu.vector_store %arg4[%c0_10, %c0_11], %14 {strides = array<i32>} : memref<4x128xf32, #tpu.memory_space<vmem>>, vector<4x128xf32>,
    return
  }
  func.func @transform_0(%arg0: i32) -> (i32, i32, i32) {
    %c0_i32 = arith.constant 0 : i32
    %c0_i32_0 = arith.constant 0 : i32
    %c0_i32_1 = arith.constant 0 : i32
    %c0_i32_2 = arith.constant 0 : i32
    return %c0_i32, %c0_i32_0, %c0_i32_1 : i32, i32, i32
  }
  func.func @transform_1(%arg0: i32) -> (i32, i32) {
    %c0_i32 = arith.constant 0 : i32
    %c0_i32_0 = arith.constant 0 : i32
    %c0_i32_1 = arith.constant 0 : i32
    return %c0_i32, %c0_i32_0 : i32, i32
  }
  func.func @transform_2(%arg0: i32) -> (i32, i32) {
    %c0_i32 = arith.constant 0 : i32
    %c0_i32_0 = arith.constant 0 : i32
    %c0_i32_1 = arith.constant 0 : i32
    return %c0_i32, %c0_i32_0 : i32, i32
  }
  func.func @transform_3(%arg0: i32) -> (i32, i32) {
    %c0_i32 = arith.constant 0 : i32
    %c0_i32_0 = arith.constant 0 : i32
    %c0_i32_1 = arith.constant 0 : i32
    return %c0_i32, %c0_i32_0 : i32, i32
  }
}

</mosaic_0001>

<bundles_post_ra>
// kernel: tpu_custom_call.1
= control target key start
LH: loop header
LB: loop body
LE: loop exit
PB: predicated region body
PF: predicated region fallthrough
CT: control target
= control target key end

     0   :  { %8 = vsyncpa [#allocation3], 0  ;;  %s909_s0 = inlined_call_operand.hbm [shape: f32[2,4,768], index: 0, kind: input, shape index: {}]   ;;  %s910_s1 = inlined_call_operand.hbm [shape: bf16[768,128], index: 1, kind: input, shape index: {}]   ;;  %s911_s2 = inlined_call_operand.vmem [shape: f32[1,128], index: 2, kind: input, shape index: {}]   ;;  %s912_s3 = inlined_call_operand.hbm [shape: f32[4,128], index: 3, kind: output, shape index: {}]  }
   0x1   :  { %9 = vsyncpa [#allocation6], 0 }
   0x2   :  { %10 = vsyncpa [#allocation4], 0  ;;  %s843_s12 = smov [#allocation2]   ;;  %s771_s16 = scalar_lea.hbm %s909_s0, 768 }
   0x3   :  { %s16_s13 = sshll.u32 %s843_s12, 4  ;;  %p772_p0 = scmp.ne.s32.totalorder %s909_s0, %s771_s16  ;;  %s17_s13 = int_to_ptr.vmem [resolvable:$true] %s16_s13 }
   0x4   :  { %p775_p1 = scmp.lt.u32.totalorder %s771_s16, %s909_s0 }
   0x6   :  { %p777_p2 = pnand %p775_p1, %p772_p0 }
   0x8   :  { %780 = shalt.err (!%p777_p2)
}
   0x9   :  { %s781_s21 = scalar_lea.vmem %s17_s13, 768  ;;  %p786_p4 = scmp.lt.s32.totalorder %s17_s13, %s17_s13 }
   0xa   :  { %p782_p3 = scmp.ne.s32.totalorder %s17_s13, %s781_s21  ;;  %p787_p5 = scmp.lt.s32.totalorder %s781_s21, %s781_s21 }
   0xc   :  { %p788_p6 = por %p787_p5, %p786_p4 }
   0xe   :  { %p789_p7 = pnand %p788_p6, %p782_p3 }
  0x10   :  { %792 = shalt.err (!%p789_p7)
}
  0x11   :  { %s844_s22 = smov 384   ;;  %s845_s23 = smov 24  }
  0x12   :  { %22 = dma.hbm_to_vmem [thread:$0]  %s909_s0, 768, %s17_s13, [#allocation3], %s844_s22, %s844_s22, %s845_s23  }
  0x13   :  { %s846_s26 = smov [#allocation5]   ;;  %s793_s30 = scalar_lea.hbm %s910_s1, 6144 }
  0x14   :  { %s28_s27 = sshll.u32 %s846_s26, 4  ;;  %p794_p8 = scmp.ne.s32.totalorder %s910_s1, %s793_s30  ;;  %s29_s27 = int_to_ptr.vmem [resolvable:$true] %s28_s27 }
  0x15   :  { %p797_p9 = scmp.lt.u32.totalorder %s793_s30, %s910_s1 }
  0x17   :  { %p799_p10 = pnand %p797_p9, %p794_p8 }
  0x19   :  { %802 = shalt.err (!%p799_p10)
}
  0x1a   :  { %s803_s8 = scalar_lea.vmem %s29_s27, 6144  ;;  %p808_p12 = scmp.lt.s32.totalorder %s29_s27, %s29_s27 }
  0x1b   :  { %p804_p11 = scmp.ne.s32.totalorder %s29_s27, %s803_s8  ;;  %p809_p13 = scmp.lt.s32.totalorder %s803_s8, %s803_s8 }
  0x1d   :  { %p810_p0 = por %p809_p13, %p808_p12 }
  0x1f   :  { %p811_p1 = pnand %p810_p0, %p804_p11 }
  0x21   :  { %814 = shalt.err (!%p811_p1)
}
  0x22   :  { %s847_s0 = smov 64   ;;  %s848_s9 = smov 4  }
  0x23   :  { %34 = dma.hbm_to_vmem [thread:$0]  %s910_s1, 6144, %s29_s27, [#allocation6], %s847_s0, %s847_s0, %s848_s9  }
  0x24   :  { %837 = dma.done.wait [#allocation3], 768  }
  0x25   :  { %838 = vsyncadd [#allocation3], 4294966528 }
  0x26   :  { %839 = dma.done.wait [#allocation6], 6144  }
  0x27   :  { %840 = vsyncadd [#allocation6], 4294961152  ;;  %v723_v0 = vld [vmem:[#allocation5 + $0x40] sm:$0xff]   ;;  %v727_v4 = vld [vmem:[#allocation5 + $0x48] sm:$0xff]   ;;  %s849_s13 = smov [#allocation7]  }
  0x28   :  { %v724_v1 = vld [vmem:[#allocation5] sm:$0xff]   ;;  %650 = vmatprep.subr.bf16.mxu0 %v723_v0  ;;  %v728_v5 = vld [vmem:[#allocation5 + $0x8] sm:$0xff]   ;;  %v731_v8 = vld [vmem:[#allocation5 + $0x50] sm:$0xff]   ;;  %s591_s14 = sshll.u32 %s849_s13, 4  ;;  %s592_s14 = int_to_ptr.vmem [resolvable:$true] %s591_s14 }
  0x29   :  { %v725_v2 = vld [vmem:[#allocation5 + $0xc0] sm:$0xff]   ;;  %651 = vmatpush3.bf16.msra.mxu0 %v724_v1  ;;  %v729_v6 = vld [vmem:[#allocation5 + $0xc8] sm:$0xff]   ;;  %v732_v9 = vld [vmem:[#allocation5 + $0x10] sm:$0xff]   ;;  %p820_p3 = scmp.lt.s32.totalorder %s592_s14, %s592_s14 }
  0x2a   :  { %v726_v3 = vld [vmem:[#allocation5 + $0x80] sm:$0xff]   ;;  %672 = vmatprep.subr.bf16.mxu1 %v725_v2  ;;  %652 = vmatprep.subr.bf16.mxu0 %v727_v4  ;;  %v730_v7 = vld [vmem:[#allocation5 + $0x88] sm:$0xff]   ;;  %v733_v10 = vld [vmem:[#allocation5 + $0xd0] sm:$0xff]  }
  0x2b   :  { %673 = vmatpush3.bf16.msra.mxu1 %v726_v3  ;;  %v734_v11 = vld [vmem:[#allocation5 + $0x90] sm:$0xff]   ;;  %v735_v12 = vld [vmem:[#allocation5 + $0x58] sm:$0xff]   ;;  %v739_v16 = vld [vmem:[#allocation5 + $0x60] sm:$0xff]  }
  0x2c   :  { %674 = vmatprep.subr.bf16.mxu1 %v729_v6  ;;  %v736_v13 = vld [vmem:[#allocation5 + $0x18] sm:$0xff]   ;;  %v740_v17 = vld [vmem:[#allocation5 + $0x20] sm:$0xff]   ;;  %v743_v20 = vld [vmem:[#allocation5 + $0x68] sm:$0xff]  }
  0x2d   :  { %653 = vmatpush3.bf16.msra.mxu0 %v728_v5  ;;  %v737_v14 = vld [vmem:[#allocation5 + $0xd8] sm:$0xff]   ;;  %v741_v18 = vld [vmem:[#allocation5 + $0xe0] sm:$0xff]   ;;  %v744_v21 = vld [vmem:[#allocation5 + $0x28] sm:$0xff]  }
  0x2e   :  { %654 = vmatprep.subr.bf16.mxu0 %v731_v8  ;;  %v738_v15 = vld [vmem:[#allocation5 + $0x98] sm:$0xff]   ;;  %v742_v19 = vld [vmem:[#allocation5 + $0xa0] sm:$0xff]   ;;  %v745_v22 = vld [vmem:[#allocation5 + $0xe8] sm:$0xff]  }
  0x2f   :  { %675 = vmatpush3.bf16.msra.mxu1 %v730_v7  ;;  %v746_v23 = vld [vmem:[#allocation5 + $0xa8] sm:$0xff]   ;;  %v747_v24 = vld [vmem:[#allocation5 + $0x70] sm:$0xff]   ;;  %v751_v28 = vld [vmem:[#allocation5 + $0x78] sm:$0xff]  }
  0x30   :  { %676 = vmatprep.subr.bf16.mxu1 %v733_v10  ;;  %v748_v25 = vld [vmem:[#allocation5 + $0x30] sm:$0xff]   ;;  %v752_v29 = vld [vmem:[#allocation5 + $0x38] sm:$0xff]   ;;  %v48_v32 = vld [vmem:[#allocation2 + $0x18] sm:$0xff] }
  0x31   :  { %655 = vmatpush3.bf16.msra.mxu0 %v732_v9  ;;  %v749_v26 = vld [vmem:[#allocation5 + $0xf0] sm:$0xff]   ;;  %v753_v30 = vld [vmem:[#allocation5 + $0xf8] sm:$0xff]   ;;  %v755_v35 = vld [vmem:[#allocation5 + $0x140] sm:$0xff]  }
  0x32   :  { %656 = vmatprep.subr.bf16.mxu0 %v735_v12  ;;  %v750_v27 = vld [vmem:[#allocation5 + $0xb0] sm:$0xff]   ;;  %v754_v34 = vld [vmem:[#allocation5 + $0xb8] sm:$0xff]   ;;  %v756_v44 = vld [vmem:[#allocation5 + $0x100] sm:$0xff]  }
  0x33   :  { %677 = vmatpush3.bf16.msra.mxu1 %v734_v11  ;;  %v44_v31 = vld [vmem:[#allocation2] sm:$0xff]  ;;  %v45_v36 = vld [vmem:[#allocation2 + $0x8] sm:$0xff]  ;;  %v757_v46 = vld [vmem:[#allocation5 + $0x148] sm:$0xff]  }
  0x34   :  { %678 = vmatprep.subr.bf16.mxu1 %v737_v14  ;;  %v51_v33 = vadd.f32 %v48_v32, %v44_v31  ;;  %v49_v38 = vld [vmem:[#allocation2 + $0x20] sm:$0xff]  ;;  %v758_v49 = vld [vmem:[#allocation5 + $0x108] sm:$0xff]   ;;  %v761_v52 = vld [vmem:[#allocation5 + $0x158] sm:$0xff]  }
  0x35   :  { %657 = vmatpush3.bf16.msra.mxu0 %v736_v13  ;;  %v52_v39 = vadd.f32 %v49_v38, %v45_v36  ;;  %v759_v50 = vld [vmem:[#allocation5 + $0x150] sm:$0xff]   ;;  %v46_v53 = vld [vmem:[#allocation2 + $0x10] sm:$0xff]  ;;  %v50_v54 = vld [vmem:[#allocation2 + $0x28] sm:$0xff] }
  0x36   :  { %658 = vmatprep.subr.bf16.mxu0 %v739_v16  ;;  %v54_v37 = vmul.f32 0.5, %v51_v33  ;;  %v760_v51 = vld [vmem:[#allocation5 + $0x110] sm:$0xff]   ;;  %v762_v55 = vld [vmem:[#allocation5 + $0x118] sm:$0xff]   ;;  %v53_v56 = vadd.f32 %v50_v54, %v46_v53  ;;  %v763_v57 = vld [vmem:[#allocation5 + $0x160] sm:$0xff]  }
  0x37   :  { %679 = vmatpush3.bf16.msra.mxu1 %v738_v15  ;;  %v55_v42 = vmul.f32 0.5, %v52_v39  ;;  %v764_v59 = vld [vmem:[#allocation5 + $0x120] sm:$0xff]   ;;  %v765_v61 = vld [vmem:[#allocation5 + $0x168] sm:$0xff]   ;;  %v767_v0 = vld [vmem:[#allocation5 + $0x170] sm:$0xff]  }
  0x38   :  { %680 = vmatprep.subr.bf16.mxu1 %v741_v18  ;;  %v60_v40 = vcombine.high %v54_v37, %v54_v37  ;;  %v66_v41 = vpack.c.bf16 %v54_v37, %v54_v37  ;;  %v56_v58 = vmul.f32 0.5, %v53_v56  ;;  %v766_v63 = vld [vmem:[#allocation5 + $0x128] sm:$0xff]   ;;  %v768_v1 = vld [vmem:[#allocation5 + $0x130] sm:$0xff]   ;;  %v769_v2 = vld [vmem:[#allocation5 + $0x178] sm:$0xff]  }
  0x39   :  { %659 = vmatpush3.bf16.msra.mxu0 %v740_v17  ;;  %v61_v45 = vcombine.high %v55_v42, %v55_v42  ;;  %v68_v47 = vpack.c.bf16 %v55_v42, %v55_v42  ;;  %v770_v3 = vld [vmem:[#allocation5 + $0x138] sm:$0xff]   ;;  %v601_v6 = vld [vmem:[%s911_s2] ss:$0 sm:$0xff]  ;;  %s815_s2 = scalar_lea.vmem %s592_s14, 64 }
  0x3a   :  { %660 = vmatprep.subr.bf16.mxu0 %v743_v20  ;;  %v67_v43 = vpack.c.bf16 %v60_v40, %v60_v40  ;;  %v62_v60 = vcombine.high %v56_v58, %v56_v58  ;;  %v70_v4 = vpack.c.bf16 %v56_v58, %v56_v58  ;;  %p816_p2 = scmp.ne.s32.totalorder %s592_s14, %s815_s2  ;;  %p821_p4 = scmp.lt.s32.totalorder %s815_s2, %s815_s2 }
  0x3b   :  { %681 = vmatpush3.bf16.msra.mxu1 %v742_v19  ;;  %v69_v48 = vpack.c.bf16 %v61_v45, %v61_v45 }
  0x3c   :  { %682 = vmatprep.subr.bf16.mxu1 %v745_v22  ;;  %495 = vmatprep.mubr.bf16.mxu0 %v67_v43  ;;  %v71_v62 = vpack.c.bf16 %v62_v60, %v62_v60  ;;  %p822_p5 = por %p821_p4, %p820_p3 }
  0x3d   :  { %661 = vmatpush3.bf16.msra.mxu0 %v744_v21  ;;  %535 = vmatprep.mubr.bf16.mxu1 %v69_v48 }
  0x3e   :  { %662 = vmatprep.subr.bf16.mxu0 %v747_v24  ;;  %p823_p6 = pnand %p822_p5, %p816_p2 }
  0x3f   :  { %683 = vmatpush3.bf16.msra.mxu1 %v746_v23 }
  0x40   :  { %684 = vmatprep.subr.bf16.mxu1 %v749_v26 }
  0x41   :  { %663 = vmatpush3.bf16.msra.mxu0 %v748_v25 }
  0x42   :  { %664 = vmatprep.subr.bf16.mxu0 %v751_v28 }
  0x43   :  { %685 = vmatpush3.bf16.msra.mxu1 %v750_v27 }
  0x44   :  { %686 = vmatprep.subr.bf16.mxu1 %v753_v30 }
  0x45   :  { %665 = vmatpush3.bf16.msra.mxu0 %v752_v29 }
  0x46   :  { %694 = vmatprep.subr.bf16.mxu0 %v755_v35 }
  0x47   :  { %687 = vmatpush3.bf16.msra.mxu1 %v754_v34 }
  0x48   :  { %496 = vmatmul.mubr.bf16.vlgmr.msra.gmra.mrb[0].mxu0 %v66_v41 }
  0x49   :  { %695 = vmatpush3.bf16.msra.mxu0 %v756_v44  ;;  %575 = vmatprep.mubr.bf16.mxu0 %v71_v62 }
  0x4a   :  { %696 = vmatprep.subr.bf16.mxu0 %v757_v46  ;;  %536 = vmatmul.mubr.bf16.vlgmr.msra.gmra.mrb[0].mxu1 %v68_v47 }
  0x4d   :  { %697 = vmatpush3.bf16.msra.mxu0 %v758_v49 }
  0x4e   :  { %698 = vmatprep.subr.bf16.mxu0 %v759_v50 }
  0x51   :  { %699 = vmatpush3.bf16.msra.mxu0 %v760_v51 }
  0x52   :  { %700 = vmatprep.subr.bf16.mxu0 %v761_v52 }
  0x55   :  { %701 = vmatpush3.bf16.msra.mxu0 %v762_v55 }
  0x56   :  { %702 = vmatprep.subr.bf16.mxu0 %v763_v57 }
  0x59   :  { %703 = vmatpush3.bf16.msra.mxu0 %v764_v59 }
  0x5a   :  { %704 = vmatprep.subr.bf16.mxu0 %v765_v61 }
  0x5d   :  { %705 = vmatpush3.bf16.msra.mxu0 %v766_v63 }
  0x5e   :  { %706 = vmatprep.subr.bf16.mxu0 %v767_v0 }
  0x61   :  { %707 = vmatpush3.bf16.msra.mxu0 %v768_v1 }
  0x62   :  { %708 = vmatprep.subr.bf16.mxu0 %v769_v2 }
  0x65   :  { %709 = vmatpush3.bf16.msra.mxu0 %v770_v3 }
  0x68   :  { %576 = vmatmul.mubr.bf16.vlgmr.msra.gmra.mrb[4].mxu0 %v70_v4 }
 0x11b   :  { %v666_v5 = vpop.f32.mrb[0].mxu0 }
 0x11c   :  { %v667_v7 = vpop.f32.mrb[1].mxu0 }
 0x11d   :  { %v668_v8 = vadd.f32 %v667_v7, %v666_v5  ;;  %v669_v9 = vpop.f32.mrb[2].mxu0  ;;  %v688_v10 = vpop.f32.mrb[0].mxu1 }
 0x11e   :  { %v670_v11 = vpop.f32.mrb[3].mxu0  ;;  %v689_v13 = vpop.f32.mrb[1].mxu1 }
 0x11f   :  { %v498_v12 = vadd.f32 %v668_v8, %v601_v6  ;;  %v690_v14 = vadd.f32 %v689_v13, %v688_v10  ;;  %v691_v15 = vpop.f32.mrb[2].mxu1 }
 0x120   :  { %v692_v16 = vpop.f32.mrb[3].mxu1 }
 0x121   :  { %v538_v17 = vadd.f32 %v690_v14, %v498_v12 }
 0x13b   :  { %v710_v18 = vpop.f32.mrb[4].mxu0 }
 0x13c   :  { %v711_v19 = vpop.f32.mrb[5].mxu0 }
 0x13d   :  { %v712_v20 = vadd.f32 %v711_v19, %v710_v18  ;;  %v713_v21 = vpop.f32.mrb[6].mxu0 }
 0x13e   :  { %v714_v22 = vpop.f32.mrb[7].mxu0 }
 0x13f   :  { %v578_v23 = vadd.f32 %v712_v20, %v538_v17 }
 0x141   :  { %v583_v24 = vmax.f32 %v578_v23, 0.0 }
 0x143   :  { %584 = vst [vmem:[#allocation7] sm:$0xf] %v583_v24 }
 0x144   :  { %826 = shalt.err (!%p823_p6)
}
 0x145   :  { %s827_s17 = scalar_lea.hbm %s912_s3, 64 }
 0x146   :  { %p828_p7 = scmp.ne.s32.totalorder %s912_s3, %s827_s17  ;;  %p831_p8 = scmp.lt.u32.totalorder %s827_s17, %s912_s3 }
 0x148   :  { %p833_p9 = pnand %p831_p8, %p828_p7 }
 0x14a   :  { %836 = shalt.err (!%p833_p9)
}
 0x14b   :  { %594 = dma.vmem_to_hbm [thread:$0]  %s592_s14, 64, %s912_s3, [#allocation4]  }
 0x14c   :  { %841 = dma.done.wait [#allocation4], 64  }
 0x14d   :  { %842 = vsyncadd [#allocation4], 4294967232 }
 0x14e   :  { %598 = vsyncpa [#allocation3], 1 }
 0x14f   :  { %599 = vsyncpa [#allocation6], 1 }
 0x150   :  { %600 = vsyncpa [#allocation4], 1 }

</bundles_post_ra>
